<compile_context>
chip_gen: v6e
topology: v6e:2x2x1
jax: 0.10.0
libtpu: 0.0.40
codegen_flags: <defaults>
</compile_context>

<pallas_src>
import jax
import jax.numpy as jnp
from jax.experimental import pallas as pl
from jax.experimental.pallas import tpu as pltpu

LANE = 128
SUBLANE = 8


def _round_up(n, m):
    return ((n + m - 1) // m) * m


def mlp_kernel(x_ref, w1_ref, b1_ref, w2_ref, b2_ref, w3_ref, b3_ref, o_ref):
    # x tile: [tb, d_in] f32 -> cast to bf16 for the MXU (free under the DMA).
    x = x_ref[...].astype(jnp.bfloat16)

    # layer1: Linear (MXU, f32 accumulation) + ReLU (f32 on VPU)
    h1 = jnp.dot(x, w1_ref[...], preferred_element_type=jnp.float32) + b1_ref[...]
    h1 = jnp.maximum(h1, 0.0).astype(jnp.bfloat16)

    # layer2: Linear + sigmoid (exp on the EUP; exact divide is free, mem-bound)
    h2 = jnp.dot(h1, w2_ref[...], preferred_element_type=jnp.float32) + b2_ref[...]
    h2 = (1.0 / (1.0 + jnp.exp(-h2))).astype(jnp.bfloat16)

    # out: Linear + numerically-stable softmax over the (narrow) class axis,
    # with an exact divide so every row sums to 1 within f32 rounding.
    logits = jnp.dot(h2, w3_ref[...], preferred_element_type=jnp.float32) + b3_ref[...]
    m = jnp.max(logits, axis=-1, keepdims=True)
    e = jnp.exp(logits - m)
    o_ref[...] = e / jnp.sum(e, axis=-1, keepdims=True)


def prepare_params(params):
    """One-time weight prep: pad l1 to the lane width (exact; zero pad) and
    cast weights to bf16. Biases stay f32. Call once, reuse per inference."""
    w1, b1, w2, b2, w3, b3 = params  # [in, out] layout, f32; biases [1, out]
    l1 = w1.shape[1]
    l1_p = _round_up(l1, LANE)

    w1_p = jnp.pad(w1, ((0, 0), (0, l1_p - l1))).astype(jnp.bfloat16)
    b1_p = jnp.pad(b1, ((0, 0), (0, l1_p - l1)))
    w2_p = jnp.pad(w2, ((0, l1_p - l1), (0, 0))).astype(jnp.bfloat16)
    b2_p = b2
    w3_p = w3.astype(jnp.bfloat16)
    b3_p = b3
    return (w1_p, b1_p, w2_p, b2_p, w3_p, b3_p)


def _choose_tb(B, block_batch):
    if B <= 512:
        return max(SUBLANE, _round_up(B, SUBLANE))
    # Guarantee >= 2 grid steps so megacore (v7x) can split the batch axis,
    # while large batches use the full block_batch tile.
    return min(block_batch, _round_up((B + 1) // 2, 256))


def multiclass_simple_classification(x, prepared_params, block_batch=4096):
    """x: [B, input_dim] f32 -> [B, output_dim] f32 softmax probabilities."""
    w1_p, b1_p, w2_p, b2_p, w3_p, b3_p = prepared_params
    B, d_in = x.shape
    out_dim = w3_p.shape[1]

    tb = _choose_tb(B, block_batch)
    grid = (pl.cdiv(B, tb),)

    def resident(shape):
        return pl.BlockSpec(shape, lambda i: (0,) * len(shape))

    out = pl.pallas_call(
        mlp_kernel,
        out_shape=jax.ShapeDtypeStruct((B, out_dim), jnp.float32),
        grid=grid,
        in_specs=[
            pl.BlockSpec((tb, d_in), lambda i: (i, 0)),   # streamed f32 x tile
            resident(w1_p.shape), resident(b1_p.shape),
            resident(w2_p.shape), resident(b2_p.shape),
            resident(w3_p.shape), resident(b3_p.shape),
        ],
        out_specs=pl.BlockSpec((tb, out_dim), lambda i: (i, 0)),  # narrow output
        compiler_params=pltpu.CompilerParams(
            dimension_semantics=("parallel",),
            vmem_limit_bytes=32 * 1024 * 1024,
        ),
    )(x, w1_p, b1_p, w2_p, b2_p, w3_p, b3_p)

    return out


def reference(x, params):
    w1, b1, w2, b2, w3, b3 = params
    h1 = jnp.maximum(x @ w1 + b1, 0.0)
    h2 = jax.nn.sigmoid(h1 @ w2 + b2)
    return jax.nn.softmax(h2 @ w3 + b3, axis=1)


def init_params(key, input_dim, output_dim, l1=128, l2=64):
    # Deterministic synthetic init (uniform, like PyTorch's default Linear).
    ks = jax.random.split(key, 6)

    def lin(kw, kb, fan_in, fan_out):
        bound = 1.0 / jnp.sqrt(fan_in)
        w = jax.random.uniform(kw, (fan_in, fan_out), jnp.float32, -bound, bound)
        b = jax.random.uniform(kb, (1, fan_out), jnp.float32, -bound, bound)
        return w, b

    w1, b1 = lin(ks[0], ks[1], input_dim, l1)
    w2, b2 = lin(ks[2], ks[3], l1, l2)
    w3, b3 = lin(ks[4], ks[5], l2, output_dim)
    return (w1, b1, w2, b2, w3, b3)


if __name__ == "__main__":
    key = jax.random.PRNGKey(0)
    k_x, k_p = jax.random.split(key)

    batch, input_dim, output_dim = 8, 32, 10
    x = jax.random.normal(k_x, (batch, input_dim), jnp.float32)
    params = init_params(k_p, input_dim, output_dim)

    prepared = prepare_params(params)          # hoisted one-time weight prep
    out = multiclass_simple_classification(x, prepared)
    jax.block_until_ready(out)

    assert out.shape == (batch, output_dim)

    # softmax rows sum to 1 within f32 rounding (exact divide in the epilogue)
    row_sums = jnp.sum(out, axis=1)
    assert jnp.allclose(row_sums, jnp.ones_like(row_sums), atol=1e-5)

    # check vs a pure-JAX f32 reference (bf16 matmul operands -> loose atol)
    ref = reference(x, params)
    assert jnp.allclose(out, ref, atol=2e-2)

    print("KERNEL_OK")
</pallas_src>

<mosaic_0001>
module attributes {stable_mosaic.version = 11 : i64} {
  func.func @mlp_kernel(%arg0: i32, %arg1: memref<8x32xf32, #tpu.memory_space<vmem>>, %arg2: memref<32x128xbf16, #tpu.memory_space<vmem>>, %arg3: memref<1x128xf32, #tpu.memory_space<vmem>>, %arg4: memref<128x64xbf16, #tpu.memory_space<vmem>>, %arg5: memref<1x64xf32, #tpu.memory_space<vmem>>, %arg6: memref<64x10xbf16, #tpu.memory_space<vmem>>, %arg7: memref<1x10xf32, #tpu.memory_space<vmem>>, %arg8: memref<8x10xf32, #tpu.memory_space<vmem>>) attributes {dimension_semantics = [#tpu.dimension_semantics<parallel>], iteration_bounds = array<i64: 1>, scalar_prefetch = 0 : i64, scratch_operands = 0 : i64, tpu.core_type = #tpu.core_type<tc>, window_params = [{transform_indices = @transform_0, window_bounds = array<i64: 8, 32>}, {pipeline_mode = #tpu.pipeline_mode<synchronous>, transform_indices = @transform_1, window_bounds = array<i64: 32, 128>}, {pipeline_mode = #tpu.pipeline_mode<synchronous>, transform_indices = @transform_2, window_bounds = array<i64: 1, 128>}, {pipeline_mode = #tpu.pipeline_mode<synchronous>, transform_indices = @transform_3, window_bounds = array<i64: 128, 64>}, {pipeline_mode = #tpu.pipeline_mode<synchronous>, transform_indices = @transform_4, window_bounds = array<i64: 1, 64>}, {pipeline_mode = #tpu.pipeline_mode<synchronous>, transform_indices = @transform_5, window_bounds = array<i64: 64, 10>}, {pipeline_mode = #tpu.pipeline_mode<synchronous>, transform_indices = @transform_6, window_bounds = array<i64: 1, 10>}, {transform_indices = @transform_7, window_bounds = array<i64: 8, 10>}]} {
    %c0 = arith.constant 0 : index
    %c0_0 = arith.constant 0 : index
    %0 = vector.load %arg1[%c0, %c0_0] : memref<8x32xf32, #tpu.memory_space<vmem>>, vector<8x32xf32>
    %1 = arith.truncf %0 : vector<8x32xf32> to vector<8x32xbf16>
    %c0_1 = arith.constant 0 : index
    %c0_2 = arith.constant 0 : index
    %2 = vector.load %arg2[%c0_1, %c0_2] : memref<32x128xbf16, #tpu.memory_space<vmem>>, vector<32x128xbf16>
    %cst = arith.constant dense<0.000000e+00> : vector<8x128xf32>
    %3 = tpu.matmul %1, %2, %cst {dimension_numbers = #tpu.dot_dimension_numbers<[1], [0], [0], [1], [0, 0, 1, 1], [], []>} : vector<8x32xbf16>, vector<32x128xbf16>, vector<8x128xf32> -> vector<8x128xf32>
    %c0_3 = arith.constant 0 : index
    %c0_4 = arith.constant 0 : index
    %4 = vector.load %arg3[%c0_3, %c0_4] : memref<1x128xf32, #tpu.memory_space<vmem>>, vector<1x128xf32>
    %5 = vector.broadcast %4 : vector<1x128xf32> to vector<8x128xf32>
    %6 = arith.addf %3, %5 : vector<8x128xf32>
    %cst_5 = arith.constant 0.000000e+00 : f32
    %7 = vector.broadcast %cst_5 : f32 to vector<8x128xf32>
    %8 = arith.maximumf %6, %7 : vector<8x128xf32>
    %9 = arith.truncf %8 : vector<8x128xf32> to vector<8x128xbf16>
    %c0_6 = arith.constant 0 : index
    %c0_7 = arith.constant 0 : index
    %10 = vector.load %arg4[%c0_6, %c0_7] : memref<128x64xbf16, #tpu.memory_space<vmem>>, vector<128x64xbf16>
    %cst_8 = arith.constant dense<0.000000e+00> : vector<8x64xf32>
    %11 = tpu.matmul %9, %10, %cst_8 {dimension_numbers = #tpu.dot_dimension_numbers<[1], [0], [0], [1], [0, 0, 1, 1], [], []>} : vector<8x128xbf16>, vector<128x64xbf16>, vector<8x64xf32> -> vector<8x64xf32>
    %c0_9 = arith.constant 0 : index
    %c0_10 = arith.constant 0 : index
    %12 = vector.load %arg5[%c0_9, %c0_10] : memref<1x64xf32, #tpu.memory_space<vmem>>, vector<1x64xf32>
    %13 = vector.broadcast %12 : vector<1x64xf32> to vector<8x64xf32>
    %14 = arith.addf %11, %13 : vector<8x64xf32>
    %cst_11 = arith.constant 0.000000e+00 : f32
    %15 = vector.broadcast %cst_11 : f32 to vector<8x64xf32>
    %16 = arith.subf %15, %14 : vector<8x64xf32>
    %17 = math.exp %16 : vector<8x64xf32>
    %cst_12 = arith.constant 1.000000e+00 : f32
    %18 = vector.broadcast %cst_12 : f32 to vector<8x64xf32>
    %19 = arith.addf %18, %17 : vector<8x64xf32>
    %cst_13 = arith.constant 1.000000e+00 : f32
    %20 = vector.broadcast %cst_13 : f32 to vector<8x64xf32>
    %21 = arith.divf %20, %19 : vector<8x64xf32>
    %22 = arith.truncf %21 : vector<8x64xf32> to vector<8x64xbf16>
    %c0_14 = arith.constant 0 : index
    %c0_15 = arith.constant 0 : index
    %23 = vector.load %arg6[%c0_14, %c0_15] : memref<64x10xbf16, #tpu.memory_space<vmem>>, vector<64x10xbf16>
    %cst_16 = arith.constant dense<0.000000e+00> : vector<8x10xf32>
    %24 = tpu.matmul %22, %23, %cst_16 {dimension_numbers = #tpu.dot_dimension_numbers<[1], [0], [0], [1], [0, 0, 1, 1], [], []>} : vector<8x64xbf16>, vector<64x10xbf16>, vector<8x10xf32> -> vector<8x10xf32>
    %c0_17 = arith.constant 0 : index
    %c0_18 = arith.constant 0 : index
    %25 = vector.load %arg7[%c0_17, %c0_18] : memref<1x10xf32, #tpu.memory_space<vmem>>, vector<1x10xf32>
    %26 = vector.broadcast %25 : vector<1x10xf32> to vector<8x10xf32>
    %27 = arith.addf %24, %26 : vector<8x10xf32>
    %cst_19 = arith.constant dense<0xFF800000> : vector<8xf32>
    %28 = vector.multi_reduction <maximumf>, %27, %cst_19 [1] : vector<8x10xf32> to vector<8xf32>
    %29 = vector.shape_cast %28 : vector<8xf32> to vector<8x1xf32>
    %30 = vector.broadcast %29 : vector<8x1xf32> to vector<8x10xf32>
    %31 = arith.subf %27, %30 : vector<8x10xf32>
    %32 = math.exp %31 : vector<8x10xf32>
    %cst_20 = arith.constant dense<0.000000e+00> : vector<8xf32>
    %33 = vector.multi_reduction <add>, %32, %cst_20 [1] : vector<8x10xf32> to vector<8xf32>
    %34 = vector.shape_cast %33 : vector<8xf32> to vector<8x1xf32>
    %35 = vector.broadcast %34 : vector<8x1xf32> to vector<8x10xf32>
    %36 = arith.divf %32, %35 : vector<8x10xf32>
    %c0_21 = arith.constant 0 : index
    %c0_22 = arith.constant 0 : index
    %37 = vector.load %arg8[%c0_21, %c0_22] : memref<8x10xf32, #tpu.memory_space<vmem>>, vector<8x10xf32>
    tpu.vector_store %arg8[%c0_21, %c0_22], %36 {strides = array<i32>} : memref<8x10xf32, #tpu.memory_space<vmem>>, vector<8x10xf32>,
    return
  }
  func.func @transform_0(%arg0: i32) -> (i32, i32) {
    %c0_i32 = arith.constant 0 : i32
    %c0_i32_0 = arith.constant 0 : i32
    return %arg0, %c0_i32 : i32, i32
  }
  func.func @transform_1(%arg0: i32) -> (i32, i32) {
    %c0_i32 = arith.constant 0 : i32
    %c0_i32_0 = arith.constant 0 : i32
    %c0_i32_1 = arith.constant 0 : i32
    return %c0_i32, %c0_i32_0 : i32, i32
  }
  func.func @transform_2(%arg0: i32) -> (i32, i32) {
    %c0_i32 = arith.constant 0 : i32
    %c0_i32_0 = arith.constant 0 : i32
    %c0_i32_1 = arith.constant 0 : i32
    return %c0_i32, %c0_i32_0 : i32, i32
  }
  func.func @transform_3(%arg0: i32) -> (i32, i32) {
    %c0_i32 = arith.constant 0 : i32
    %c0_i32_0 = arith.constant 0 : i32
    %c0_i32_1 = arith.constant 0 : i32
    return %c0_i32, %c0_i32_0 : i32, i32
  }
  func.func @transform_4(%arg0: i32) -> (i32, i32) {
    %c0_i32 = arith.constant 0 : i32
    %c0_i32_0 = arith.constant 0 : i32
    %c0_i32_1 = arith.constant 0 : i32
    return %c0_i32, %c0_i32_0 : i32, i32
  }
  func.func @transform_5(%arg0: i32) -> (i32, i32) {
    %c0_i32 = arith.constant 0 : i32
    %c0_i32_0 = arith.constant 0 : i32
    %c0_i32_1 = arith.constant 0 : i32
    return %c0_i32, %c0_i32_0 : i32, i32
  }
  func.func @transform_6(%arg0: i32) -> (i32, i32) {
    %c0_i32 = arith.constant 0 : i32
    %c0_i32_0 = arith.constant 0 : i32
    %c0_i32_1 = arith.constant 0 : i32
    return %c0_i32, %c0_i32_0 : i32, i32
  }
  func.func @transform_7(%arg0: i32) -> (i32, i32) {
    %c0_i32 = arith.constant 0 : i32
    %c0_i32_0 = arith.constant 0 : i32
    return %arg0, %c0_i32 : i32, i32
  }
}

</mosaic_0001>

<bundles_post_ra>
// kernel: tpu_custom_call.1
= control target key start
LH: loop header
LB: loop body
LE: loop exit
PB: predicated region body
PF: predicated region fallthrough
CT: control target
= control target key end

     0   :  { %v450_v1 = vmov 0.0   ;;  %vm451_vm0 = vmmov 0   ;;  %vm53_vm1 = vcmask 261120   ;;  %s556_s0 = inlined_call_operand.vmem [shape: f32[8,32], index: 0, kind: input, shape index: {}]   ;;  %s557_s1 = inlined_call_operand.vmem [shape: bf16[32,128], index: 1, kind: input, shape index: {}]   ;;  %s558_s2 = inlined_call_operand.vmem [shape: f32[1,128], index: 2, kind: input, shape index: {}]   ;;  %s559_s3 = inlined_call_operand.vmem [shape: bf16[128,64], index: 3, kind: input, shape index: {}]   ;;  %s560_s4 = inlined_call_operand.vmem [shape: f32[1,64], index: 4, kind: input, shape index: {}]   ;;  %s561_s5 = inlined_call_operand.vmem [shape: bf16[64,10], index: 5, kind: input, shape index: {}]   ;;  %s562_s6 = inlined_call_operand.vmem [shape: f32[1,10], index: 6, kind: input, shape index: {}]   ;;  %s563_s7 = inlined_call_operand.hbm [shape: f32[8,10], index: 7, kind: output, shape index: {}]  }
   0x1   :  { %v406_v0 = vld [vmem:[%s557_s1 + $0x8] sm:$0xff]   ;;  %363 = vmatprep.subr.bf16.mxu0 %v450_v1  ;;  %v407_v2 = vld [vmem:[%s557_s1] sm:$0xff]   ;;  %371 = vmatprep.subr.bf16.mxu1 %v450_v1  ;;  %v408_v4 = vld [vmem:[%s559_s3 + $0x38] sm:$0xff]  }
   0x2   :  { %364 = vmatpush3.bf16.msra.mxu0 %v406_v0  ;;  %367 = vmatprep.mubr.msk.bf16.mxu0 %vm451_vm0, %v450_v1  ;;  %v28_v3 = vld [vmem:[%s556_s0] sm:$0xff]  ;;  %v409_v6 = vld [vmem:[%s559_s3 + $0x30] sm:$0xff]   ;;  %v410_v7 = vld [vmem:[%s559_s3 + $0x28] sm:$0xff]  }
   0x3   :  { %365 = vmatprep.subr.bf16.mxu0 %v450_v1  ;;  %387 = vmatprep.mubr.msk.bf16.mxu1 %vm451_vm0, %v450_v1  ;;  %v29_v5 = vpack.c.bf16 %v28_v3, %v28_v3 }
   0x4   :  { %372 = vmatpush3.bf16.msra.mxu1 %v408_v4 }
   0x5   :  { %373 = vmatprep.subr.bf16.mxu1 %v450_v1 }
   0x6   :  { %366 = vmatpush3.bf16.msra.mxu0 %v407_v2 }
   0x7   :  { %391 = vmatprep.subr.bf16.mxu0 %v450_v1 }
   0x8   :  { %374 = vmatpush3.bf16.msra.mxu1 %v409_v6 }
   0x9   :  { %368 = vmatmul.mubr.msk.bf16.vlgmr.msra.gmra.mxu0 %vm53_vm1, %v29_v5  ;;  %375 = vmatprep.subr.bf16.mxu1 %v450_v1 }
   0xa   :  { %399 = vmatprep.mubr.msk.bf16.mxu0 %vm451_vm0, %v450_v1 }
   0xb   :  { %12 = vsyncpa [#allocation3], 0  ;;  %v411_v8 = vld [vmem:[%s559_s3 + $0x20] sm:$0xff]   ;;  %v412_v9 = vld [vmem:[%s559_s3 + $0x18] sm:$0xff]   ;;  %vm256_vm2 = vcmask 523264   ;;  %vm300_vm3 = vcmask 80896  }
   0xc   :  { %376 = vmatpush3.bf16.msra.mxu1 %v410_v7  ;;  %v413_v10 = vld [vmem:[%s559_s3 + $0x10] sm:$0xff]   ;;  %v414_v11 = vld [vmem:[%s559_s3 + $0x8] sm:$0xff]   ;;  %v415_v12 = vld [vmem:[%s559_s3] sm:$0xff]  }
   0xd   :  { %377 = vmatprep.subr.bf16.mxu1 %v450_v1  ;;  %v327_v13 = vld [vmem:[%s558_s2] ss:$0 sm:$0xff]  ;;  %v416_v21 = vld [vmem:[%s561_s5 + $0x18] sm:$0xff]   ;;  %v417_v22 = vld [vmem:[%s561_s5 + $0x10] sm:$0xff]  }
   0xe   :  { %392 = vmatpush3.bf16.msra.mxu0 %v416_v21  ;;  %v418_v23 = vld [vmem:[%s561_s5 + $0x8] sm:$0xff]   ;;  %v419_v24 = vld [vmem:[%s561_s5] sm:$0xff]  }
   0xf   :  { %393 = vmatprep.subr.bf16.mxu0 %v450_v1  ;;  %v331_v25 = vld [vmem:[%s560_s4] ss:$0 sm:$0xff]  ;;  %s452_s4 = smov [#allocation2]  }
  0x10   :  { %378 = vmatpush3.bf16.msra.mxu1 %v411_v8  ;;  %v340_v37 = vld [vmem:[%s562_s6] ss:$0 sm:$0xff]  ;;  %s319_s6 = sshll.u32 %s452_s4, 4  ;;  %s320_s6 = int_to_ptr.vmem [resolvable:$true] %s319_s6 }
  0x11   :  { %379 = vmatprep.subr.bf16.mxu1 %v450_v1  ;;  %s428_s9 = scalar_lea.vmem %s320_s6, 128  ;;  %p433_p1 = scmp.lt.s32.totalorder %s320_s6, %s320_s6 }
  0x12   :  { %394 = vmatpush3.bf16.msra.mxu0 %v417_v22  ;;  %p429_p0 = scmp.ne.s32.totalorder %s320_s6, %s428_s9  ;;  %p434_p2 = scmp.lt.s32.totalorder %s428_s9, %s428_s9 }
  0x13   :  { %395 = vmatprep.subr.bf16.mxu0 %v450_v1 }
  0x14   :  { %380 = vmatpush3.bf16.msra.mxu1 %v412_v9  ;;  %p435_p3 = por %p434_p2, %p433_p1 }
  0x15   :  { %381 = vmatprep.subr.bf16.mxu1 %v450_v1 }
  0x16   :  { %396 = vmatpush3.bf16.msra.mxu0 %v418_v23  ;;  %p436_p4 = pnand %p435_p3, %p429_p0 }
  0x17   :  { %397 = vmatprep.subr.bf16.mxu0 %v450_v1 }
  0x18   :  { %382 = vmatpush3.bf16.msra.mxu1 %v413_v10 }
  0x19   :  { %383 = vmatprep.subr.bf16.mxu1 %v450_v1 }
  0x1a   :  { %398 = vmatpush3.bf16.msra.mxu0 %v419_v24 }
  0x1c   :  { %384 = vmatpush3.bf16.msra.mxu1 %v414_v11 }
  0x1d   :  { %385 = vmatprep.subr.bf16.mxu1 %v450_v1 }
  0x20   :  { %386 = vmatpush3.bf16.msra.mxu1 %v415_v12 }
  0xc9   :  { %v91_v14 = vpop.f32.mrf.mxu0 }
  0xca   :  { %v92_v15 = vadd.f32 %v327_v13, %v91_v14 }
  0xcb   :  { %v369_v16 = vpop.f32.mrf.mxu0 }
  0xcc   :  { %v97_v17 = vmax.f32 %v92_v15, 0.0 }
  0xcd   :  { %v94_v18 = vpop.f32.mrf.mxu0 }
  0xce   :  { %v98_v19 = vpack.c.bf16 %v97_v17, %v97_v17 }
  0xcf   :  { %v370_v20 = vpop.f32.mrf.mxu0 }
  0xd0   :  { %388 = vmatmul.mubr.bf16.vlgmr.msra.gmra.mxu1 %v98_v19 }
 0x190   :  { %v204_v26 = vpop.f32.mrf.mxu1 }
 0x191   :  { %v205_v27 = vadd.f32 %v331_v25, %v204_v26 }
 0x192   :  { %v389_v28 = vpop.f32.mrf.mxu1 }
 0x193   :  { %v210_v29 = vsub.f32 0.0, %v205_v27 }
 0x194   :  { %v207_v30 = vpop.f32.mrf.mxu1 }
 0x195   :  { %v211_v31 = vmul.f32 1.442695, %v210_v29 }
 0x196   :  { %v390_v32 = vpop.f32.mrf.mxu1 }
 0x197   :  { %420 = vpow2.f32 %v211_v31 }
 0x1a4   :  { %v421_v33 = vpop.eup %420 }
 0x1a5   :  { %v213_v34 = vadd.f32 1.0, %v421_v33 }
 0x1a7   :  { %422 = vrcp.f32 %v213_v34 }
 0x1b4   :  { %v423_v35 = vpop.eup %422 }
 0x1b5   :  { %v216_v36 = vpack.c.bf16 %v423_v35, %v423_v35 }
 0x1b7   :  { %400 = vmatmul.mubr.msk.bf16.vlgmr.msra.gmra.mxu0 %vm256_vm2, %v216_v36 }
 0x277   :  { %v294_v38 = vpop.f32.mrf.mxu0 }
 0x278   :  { %v295_v39 = vadd.f32 %v340_v37, %v294_v38 }
 0x279   :  { %v401_v40 = vpop.f32.mrf.mxu0 }
 0x27a   :  { %v301_v41 = vsel %vm300_vm3, %v295_v39, -inf }
 0x27b   :  { %302 = vmax.xlane.f32.xlu0 %v301_v41  ;;  %v297_v42 = vpop.f32.mrf.mxu0 }
 0x27d   :  { %v402_v43 = vpop.f32.mrf.mxu0 }
 0x304   :  { %v303_v44 = vpop.xlane.xlu0 %302 }
 0x305   :  { %v304_v45 = vsub.f32 %v295_v39, %v303_v44 }
 0x307   :  { %v305_v46 = vmul.f32 1.442695, %v304_v45 }
 0x309   :  { %424 = vpow2.f32 %v305_v46 }
 0x316   :  { %v425_v47 = vpop.eup %424 }
 0x317   :  { %v307_v48 = vsel %vm300_vm3, %v425_v47, 0.0 }
 0x318   :  { %308 = vadd.xlane.f32.xlu0 %v307_v48 }
 0x3a1   :  { %v309_v49 = vpop.xlane.xlu0 %308 }
 0x3a2   :  { %426 = vrcp.f32 %v309_v49 }
 0x3af   :  { %v427_v50 = vpop.eup %426 }
 0x3b0   :  { %v311_v51 = vmul.f32 %v427_v50, %v425_v47 }
 0x3b2   :  { %312 = vst.msk [vmem:[#allocation2] sm:$0xff] %vm300_vm3, %v311_v51 }
 0x3b3   :  { %439 = shalt.err (!%p436_p4)
}
 0x3b4   :  { %322 = dma.vmem_to_hbm [thread:$0]  %s320_s6, 128, %s563_s7, [#allocation3]  }
 0x3b5   :  { %448 = dma.done.wait [#allocation3], 128  }
 0x3b6   :  { %449 = vsyncadd [#allocation3], 4294967168 }
 0x3b7   :  { %326 = vsyncpa [#allocation3], 1 }

</bundles_post_ra>
